<compile_context>
chip_gen: v7x
topology: tpu7x:2x2x1
jax: 0.10.0
libtpu: 0.0.40
codegen_flags: <defaults>
</compile_context>

<pallas_src>
import functools

import jax
import jax.numpy as jnp
from jax import lax
from jax.experimental import pallas as pl
from jax.experimental.pallas import tpu as pltpu

# (in_features, out_features) per layer
_LAYER_DIMS = ((8, 6), (6, 4), (4, 2), (2, 1))
_IN_FEATURES = _LAYER_DIMS[0][0]
_CHUNK_SUBLANES = 8                       # (8, 128) f32 == one full vreg
_CHUNK = _CHUNK_SUBLANES * 128            # 1024 batch elements per inner chunk


def _param_layout():
    offs, p = [], 0
    for n_in, n_out in _LAYER_DIMS:
        w_off, p = p, p + n_in * n_out
        b_off, p = p, p + n_out
        offs.append((w_off, b_off))
    return tuple(offs), p


_PARAM_OFFSETS, _NUM_PARAMS = _param_layout()   # 82 weights + 13 biases = 95


def pack_params(params):
    """Flatten ((w, b), ...) into one 1-D f32 vector, PRE-NEGATED so the kernel
    computes sigmoid(z) = 1 / (1 + exp(acc)) with acc = -z (saves the negate)."""
    flat = []
    for w, b in params:
        flat.append((-w).reshape(-1))     # w stored (in, out), row-major
        flat.append((-b).reshape(-1))
    packed = jnp.concatenate(flat).astype(jnp.float32)
    assert packed.shape == (_NUM_PARAMS,)
    return packed


def mlp_kernel(p_ref, x_ref, o_ref):
    # p_ref: (_NUM_PARAMS,) f32 in SMEM (resident, pre-negated params).
    # x_ref: (8, n_chunks, 8, 128) f32 VMEM tile: (feature, chunk, sublane, lane).
    # o_ref: (n_chunks, 8, 128) f32 VMEM tile.
    n_chunks = x_ref.shape[1]

    def chunk_body(c, carry):
        # 8 feature slabs, each a full (8, 128) vreg.  Ref slices -> no
        # materialization of the whole (8, tb) tile.
        feats = [x_ref[k, c, :, :] for k in range(_IN_FEATURES)]
        for (n_in, n_out), (w_off, b_off) in zip(_LAYER_DIMS, _PARAM_OFFSETS):
            outs = []
            for j in range(n_out):
                # Bias-initialised accumulator + unrolled VPU broadcast MACs.
                acc = feats[0] * p_ref[w_off + j] + p_ref[b_off + j]
                for k in range(1, n_in):
                    acc = acc + feats[k] * p_ref[w_off + k * n_out + j]
                # Params are pre-negated, so acc == -z and
                # sigmoid(z) = 1 / (1 + exp(-z)) = 1 / (1 + exp(acc)).
                outs.append(pl.reciprocal(1.0 + jnp.exp(acc), approx=True))
            feats = outs
        # Final layer has a single output -> one full (8, 128) lane-dense store.
        o_ref[c, :, :] = feats[0]
        return carry

    if n_chunks == 1:
        chunk_body(0, 0)
    else:
        lax.fori_loop(0, n_chunks, chunk_body, 0, unroll=False)


def _round_up(n, m):
    return ((n + m - 1) // m) * m


def _choose_tile(batch, tile_b, min_steps=8):
    """Batch tile (multiple of _CHUNK) and padded batch size.  For large
    batches the tile is capped so the grid keeps >= min_steps steps (lets the
    "parallel" axis split across v7x's two TensorCores)."""
    b_unit = _round_up(max(batch, 1), _CHUNK)
    cap = _round_up(pl.cdiv(b_unit, min_steps), _CHUNK)
    tb = max(_CHUNK, min(_round_up(tile_b, _CHUNK), cap))
    b_pad = _round_up(b_unit, tb)
    return tb, b_pad


@functools.partial(jax.jit, static_argnames=("tile_b",))
def mlp_forward_fmajor(x_fm, packed_params, tile_b=65536):
    """Fast path.  x_fm: (8, B) f32, features-major (no transpose pass).
    Returns a flat (b_pad,) vector of sigmoid outputs (caller slices to B)."""
    _, batch = x_fm.shape
    tb, b_pad = _choose_tile(batch, tile_b)
    x_p = jnp.pad(x_fm, ((0, 0), (0, b_pad - batch)))
    # Free row-major reshape: batch -> (chunk, sublane, lane).
    x4 = x_p.reshape(_IN_FEATURES, b_pad // _CHUNK, _CHUNK_SUBLANES, 128)

    n_chunks_tile = tb // _CHUNK
    out = pl.pallas_call(
        mlp_kernel,
        out_shape=jax.ShapeDtypeStruct(
            (b_pad // _CHUNK, _CHUNK_SUBLANES, 128), jnp.float32),
        grid=(b_pad // tb,),
        in_specs=[
            pl.BlockSpec(memory_space=pltpu.MemorySpace.SMEM),   # packed params
            pl.BlockSpec((_IN_FEATURES, n_chunks_tile, _CHUNK_SUBLANES, 128),
                         lambda i: (0, i, 0, 0)),                # x tile
        ],
        out_specs=pl.BlockSpec((n_chunks_tile, _CHUNK_SUBLANES, 128),
                               lambda i: (i, 0, 0)),
        compiler_params=pltpu.CompilerParams(
            dimension_semantics=("parallel",)),                  # megacore on v7x
    )(packed_params, x4)
    return out.reshape(b_pad)


def mlp_forward(x, packed_params, tile_b=65536):
    """PyTorch-style API: x (B, 8) f32 -> (B, 1) f32.
    NOTE: the transpose below is an extra HBM pass over x; producers that can
    supply features-major (8, B) data should call mlp_forward_fmajor directly."""
    batch = x.shape[0]
    y = mlp_forward_fmajor(x.T, packed_params, tile_b=tile_b)
    return y[:batch].reshape(batch, 1)


def init_linear(key, fan_in, fan_out):
    # torch.nn.Linear default init: U(-1/sqrt(fan_in), 1/sqrt(fan_in)).
    kw, kb = jax.random.split(key)
    bound = 1.0 / (fan_in ** 0.5)
    # Stored (in, out): x @ W here == torch's x @ W.T with W (out, in).
    w = jax.random.uniform(kw, (fan_in, fan_out), jnp.float32, -bound, bound)
    b = jax.random.uniform(kb, (1, fan_out), jnp.float32, -bound, bound)
    return w, b


def _reference(x, params):
    h = x
    for w, b in params:
        h = jax.nn.sigmoid(h @ w + b)
    return h


if __name__ == "__main__":
    key = jax.random.PRNGKey(0)
    kx, k1, k2, k3, k4 = jax.random.split(key, 5)

    params = (
        init_linear(k1, 8, 6),
        init_linear(k2, 6, 4),
        init_linear(k3, 4, 2),
        init_linear(k4, 2, 1),
    )
    packed = pack_params(params)

    # Small batch: pads to a single 1024-element chunk, one grid step.
    B = 8
    x = jax.random.normal(kx, (B, 8), dtype=jnp.float32)
    out = jax.block_until_ready(mlp_forward(x, packed))
    ref = _reference(x, params)
    assert out.shape == (B, 1)
    assert jnp.allclose(out, ref, atol=2e-3), "mismatch vs reference (small batch)"

    # Multi-tile + in-kernel chunk loop: 2 grid steps x 2 chunks each, using
    # the features-major fast path (no standalone transpose pass).
    B2 = 4 * _CHUNK  # 4096
    x2 = jax.random.normal(kx, (B2, 8), dtype=jnp.float32)
    out2_flat = jax.block_until_ready(
        mlp_forward_fmajor(x2.T, packed, tile_b=2 * _CHUNK))
    ref2 = _reference(x2, params)
    assert jnp.allclose(out2_flat[:B2].reshape(B2, 1), ref2, atol=2e-3), \
        "mismatch vs reference (multi-tile)"

    print("KERNEL_OK")
</pallas_src>

<mosaic_0001>
module attributes {stable_mosaic.version = 11 : i64} {
  func.func @mlp_kernel(%arg0: i32, %arg1: memref<95xf32, #tpu.memory_space<smem>>, %arg2: memref<8x1x8x128xf32, #tpu.memory_space<vmem>>, %arg3: memref<1x8x128xf32, #tpu.memory_space<vmem>>) attributes {dimension_semantics = [#tpu.dimension_semantics<parallel>], iteration_bounds = array<i64: 1>, scalar_prefetch = 0 : i64, scratch_operands = 0 : i64, tpu.core_type = #tpu.core_type<tc>, window_params = [{transform_indices = @transform_0, window_bounds = array<i64: 95>}, {transform_indices = @transform_1, window_bounds = array<i64: 8, 1, 8, 128>}, {transform_indices = @transform_2, window_bounds = array<i64: 1, 8, 128>}]} {
    %c0 = arith.constant 0 : index
    %c0_0 = arith.constant 0 : index
    %c0_1 = arith.constant 0 : index
    %c0_2 = arith.constant 0 : index
    %0 = vector.load %arg2[%c0, %c0_0, %c0_1, %c0_2] : memref<8x1x8x128xf32, #tpu.memory_space<vmem>>, vector<1x1x8x128xf32>
    %1 = vector.shape_cast %0 : vector<1x1x8x128xf32> to vector<8x128xf32>
    %c1 = arith.constant 1 : index
    %c0_3 = arith.constant 0 : index
    %c0_4 = arith.constant 0 : index
    %c0_5 = arith.constant 0 : index
    %2 = vector.load %arg2[%c1, %c0_3, %c0_4, %c0_5] : memref<8x1x8x128xf32, #tpu.memory_space<vmem>>, vector<1x1x8x128xf32>
    %3 = vector.shape_cast %2 : vector<1x1x8x128xf32> to vector<8x128xf32>
    %c2 = arith.constant 2 : index
    %c0_6 = arith.constant 0 : index
    %c0_7 = arith.constant 0 : index
    %c0_8 = arith.constant 0 : index
    %4 = vector.load %arg2[%c2, %c0_6, %c0_7, %c0_8] : memref<8x1x8x128xf32, #tpu.memory_space<vmem>>, vector<1x1x8x128xf32>
    %5 = vector.shape_cast %4 : vector<1x1x8x128xf32> to vector<8x128xf32>
    %c3 = arith.constant 3 : index
    %c0_9 = arith.constant 0 : index
    %c0_10 = arith.constant 0 : index
    %c0_11 = arith.constant 0 : index
    %6 = vector.load %arg2[%c3, %c0_9, %c0_10, %c0_11] : memref<8x1x8x128xf32, #tpu.memory_space<vmem>>, vector<1x1x8x128xf32>
    %7 = vector.shape_cast %6 : vector<1x1x8x128xf32> to vector<8x128xf32>
    %c4 = arith.constant 4 : index
    %c0_12 = arith.constant 0 : index
    %c0_13 = arith.constant 0 : index
    %c0_14 = arith.constant 0 : index
    %8 = vector.load %arg2[%c4, %c0_12, %c0_13, %c0_14] : memref<8x1x8x128xf32, #tpu.memory_space<vmem>>, vector<1x1x8x128xf32>
    %9 = vector.shape_cast %8 : vector<1x1x8x128xf32> to vector<8x128xf32>
    %c5 = arith.constant 5 : index
    %c0_15 = arith.constant 0 : index
    %c0_16 = arith.constant 0 : index
    %c0_17 = arith.constant 0 : index
    %10 = vector.load %arg2[%c5, %c0_15, %c0_16, %c0_17] : memref<8x1x8x128xf32, #tpu.memory_space<vmem>>, vector<1x1x8x128xf32>
    %11 = vector.shape_cast %10 : vector<1x1x8x128xf32> to vector<8x128xf32>
    %c6 = arith.constant 6 : index
    %c0_18 = arith.constant 0 : index
    %c0_19 = arith.constant 0 : index
    %c0_20 = arith.constant 0 : index
    %12 = vector.load %arg2[%c6, %c0_18, %c0_19, %c0_20] : memref<8x1x8x128xf32, #tpu.memory_space<vmem>>, vector<1x1x8x128xf32>
    %13 = vector.shape_cast %12 : vector<1x1x8x128xf32> to vector<8x128xf32>
    %c7 = arith.constant 7 : index
    %c0_21 = arith.constant 0 : index
    %c0_22 = arith.constant 0 : index
    %c0_23 = arith.constant 0 : index
    %14 = vector.load %arg2[%c7, %c0_21, %c0_22, %c0_23] : memref<8x1x8x128xf32, #tpu.memory_space<vmem>>, vector<1x1x8x128xf32>
    %15 = vector.shape_cast %14 : vector<1x1x8x128xf32> to vector<8x128xf32>
    %c0_24 = arith.constant 0 : index
    %16 = memref.load %arg1[%c0_24] : memref<95xf32, #tpu.memory_space<smem>>
    %17 = vector.broadcast %16 : f32 to vector<8x128xf32>
    %18 = arith.mulf %1, %17 : vector<8x128xf32>
    %c48 = arith.constant 48 : index
    %19 = memref.load %arg1[%c48] : memref<95xf32, #tpu.memory_space<smem>>
    %20 = vector.broadcast %19 : f32 to vector<8x128xf32>
    %21 = arith.addf %18, %20 : vector<8x128xf32>
    %c6_25 = arith.constant 6 : index
    %22 = memref.load %arg1[%c6_25] : memref<95xf32, #tpu.memory_space<smem>>
    %23 = vector.broadcast %22 : f32 to vector<8x128xf32>
    %24 = arith.mulf %3, %23 : vector<8x128xf32>
    %25 = arith.addf %21, %24 : vector<8x128xf32>
    %c12 = arith.constant 12 : index
    %26 = memref.load %arg1[%c12] : memref<95xf32, #tpu.memory_space<smem>>
    %27 = vector.broadcast %26 : f32 to vector<8x128xf32>
    %28 = arith.mulf %5, %27 : vector<8x128xf32>
    %29 = arith.addf %25, %28 : vector<8x128xf32>
    %c18 = arith.constant 18 : index
    %30 = memref.load %arg1[%c18] : memref<95xf32, #tpu.memory_space<smem>>
    %31 = vector.broadcast %30 : f32 to vector<8x128xf32>
    %32 = arith.mulf %7, %31 : vector<8x128xf32>
    %33 = arith.addf %29, %32 : vector<8x128xf32>
    %c24 = arith.constant 24 : index
    %34 = memref.load %arg1[%c24] : memref<95xf32, #tpu.memory_space<smem>>
    %35 = vector.broadcast %34 : f32 to vector<8x128xf32>
    %36 = arith.mulf %9, %35 : vector<8x128xf32>
    %37 = arith.addf %33, %36 : vector<8x128xf32>
    %c30 = arith.constant 30 : index
    %38 = memref.load %arg1[%c30] : memref<95xf32, #tpu.memory_space<smem>>
    %39 = vector.broadcast %38 : f32 to vector<8x128xf32>
    %40 = arith.mulf %11, %39 : vector<8x128xf32>
    %41 = arith.addf %37, %40 : vector<8x128xf32>
    %c36 = arith.constant 36 : index
    %42 = memref.load %arg1[%c36] : memref<95xf32, #tpu.memory_space<smem>>
    %43 = vector.broadcast %42 : f32 to vector<8x128xf32>
    %44 = arith.mulf %13, %43 : vector<8x128xf32>
    %45 = arith.addf %41, %44 : vector<8x128xf32>
    %c42 = arith.constant 42 : index
    %46 = memref.load %arg1[%c42] : memref<95xf32, #tpu.memory_space<smem>>
    %47 = vector.broadcast %46 : f32 to vector<8x128xf32>
    %48 = arith.mulf %15, %47 : vector<8x128xf32>
    %49 = arith.addf %45, %48 : vector<8x128xf32>
    %50 = math.exp %49 : vector<8x128xf32>
    %cst = arith.constant 1.000000e+00 : f32
    %51 = vector.broadcast %cst : f32 to vector<8x128xf32>
    %52 = arith.addf %51, %50 : vector<8x128xf32>
    %53 = tpu.reciprocal %52 {approx = true} : vector<8x128xf32> -> vector<8x128xf32>
    %c1_26 = arith.constant 1 : index
    %54 = memref.load %arg1[%c1_26] : memref<95xf32, #tpu.memory_space<smem>>
    %55 = vector.broadcast %54 : f32 to vector<8x128xf32>
    %56 = arith.mulf %1, %55 : vector<8x128xf32>
    %c49 = arith.constant 49 : index
    %57 = memref.load %arg1[%c49] : memref<95xf32, #tpu.memory_space<smem>>
    %58 = vector.broadcast %57 : f32 to vector<8x128xf32>
    %59 = arith.addf %56, %58 : vector<8x128xf32>
    %c7_27 = arith.constant 7 : index
    %60 = memref.load %arg1[%c7_27] : memref<95xf32, #tpu.memory_space<smem>>
    %61 = vector.broadcast %60 : f32 to vector<8x128xf32>
    %62 = arith.mulf %3, %61 : vector<8x128xf32>
    %63 = arith.addf %59, %62 : vector<8x128xf32>
    %c13 = arith.constant 13 : index
    %64 = memref.load %arg1[%c13] : memref<95xf32, #tpu.memory_space<smem>>
    %65 = vector.broadcast %64 : f32 to vector<8x128xf32>
    %66 = arith.mulf %5, %65 : vector<8x128xf32>
    %67 = arith.addf %63, %66 : vector<8x128xf32>
    %c19 = arith.constant 19 : index
    %68 = memref.load %arg1[%c19] : memref<95xf32, #tpu.memory_space<smem>>
    %69 = vector.broadcast %68 : f32 to vector<8x128xf32>
    %70 = arith.mulf %7, %69 : vector<8x128xf32>
    %71 = arith.addf %67, %70 : vector<8x128xf32>
    %c25 = arith.constant 25 : index
    %72 = memref.load %arg1[%c25] : memref<95xf32, #tpu.memory_space<smem>>
    %73 = vector.broadcast %72 : f32 to vector<8x128xf32>
    %74 = arith.mulf %9, %73 : vector<8x128xf32>
    %75 = arith.addf %71, %74 : vector<8x128xf32>
    %c31 = arith.constant 31 : index
    %76 = memref.load %arg1[%c31] : memref<95xf32, #tpu.memory_space<smem>>
    %77 = vector.broadcast %76 : f32 to vector<8x128xf32>
    %78 = arith.mulf %11, %77 : vector<8x128xf32>
    %79 = arith.addf %75, %78 : vector<8x128xf32>
    %c37 = arith.constant 37 : index
    %80 = memref.load %arg1[%c37] : memref<95xf32, #tpu.memory_space<smem>>
    %81 = vector.broadcast %80 : f32 to vector<8x128xf32>
    %82 = arith.mulf %13, %81 : vector<8x128xf32>
    %83 = arith.addf %79, %82 : vector<8x128xf32>
    %c43 = arith.constant 43 : index
    %84 = memref.load %arg1[%c43] : memref<95xf32, #tpu.memory_space<smem>>
    %85 = vector.broadcast %84 : f32 to vector<8x128xf32>
    %86 = arith.mulf %15, %85 : vector<8x128xf32>
    %87 = arith.addf %83, %86 : vector<8x128xf32>
    %88 = math.exp %87 : vector<8x128xf32>
    %cst_28 = arith.constant 1.000000e+00 : f32
    %89 = vector.broadcast %cst_28 : f32 to vector<8x128xf32>
    %90 = arith.addf %89, %88 : vector<8x128xf32>
    %91 = tpu.reciprocal %90 {approx = true} : vector<8x128xf32> -> vector<8x128xf32>
    %c2_29 = arith.constant 2 : index
    %92 = memref.load %arg1[%c2_29] : memref<95xf32, #tpu.memory_space<smem>>
    %93 = vector.broadcast %92 : f32 to vector<8x128xf32>
    %94 = arith.mulf %1, %93 : vector<8x128xf32>
    %c50 = arith.constant 50 : index
    %95 = memref.load %arg1[%c50] : memref<95xf32, #tpu.memory_space<smem>>
    %96 = vector.broadcast %95 : f32 to vector<8x128xf32>
    %97 = arith.addf %94, %96 : vector<8x128xf32>
    %c8 = arith.constant 8 : index
    %98 = memref.load %arg1[%c8] : memref<95xf32, #tpu.memory_space<smem>>
    %99 = vector.broadcast %98 : f32 to vector<8x128xf32>
    %100 = arith.mulf %3, %99 : vector<8x128xf32>
    %101 = arith.addf %97, %100 : vector<8x128xf32>
    %c14 = arith.constant 14 : index
    %102 = memref.load %arg1[%c14] : memref<95xf32, #tpu.memory_space<smem>>
    %103 = vector.broadcast %102 : f32 to vector<8x128xf32>
    %104 = arith.mulf %5, %103 : vector<8x128xf32>
    %105 = arith.addf %101, %104 : vector<8x128xf32>
    %c20 = arith.constant 20 : index
    %106 = memref.load %arg1[%c20] : memref<95xf32, #tpu.memory_space<smem>>
    %107 = vector.broadcast %106 : f32 to vector<8x128xf32>
    %108 = arith.mulf %7, %107 : vector<8x128xf32>
    %109 = arith.addf %105, %108 : vector<8x128xf32>
    %c26 = arith.constant 26 : index
    %110 = memref.load %arg1[%c26] : memref<95xf32, #tpu.memory_space<smem>>
    %111 = vector.broadcast %110 : f32 to vector<8x128xf32>
    %112 = arith.mulf %9, %111 : vector<8x128xf32>
    %113 = arith.addf %109, %112 : vector<8x128xf32>
    %c32 = arith.constant 32 : index
    %114 = memref.load %arg1[%c32] : memref<95xf32, #tpu.memory_space<smem>>
    %115 = vector.broadcast %114 : f32 to vector<8x128xf32>
    %116 = arith.mulf %11, %115 : vector<8x128xf32>
    %117 = arith.addf %113, %116 : vector<8x128xf32>
    %c38 = arith.constant 38 : index
    %118 = memref.load %arg1[%c38] : memref<95xf32, #tpu.memory_space<smem>>
    %119 = vector.broadcast %118 : f32 to vector<8x128xf32>
    %120 = arith.mulf %13, %119 : vector<8x128xf32>
    %121 = arith.addf %117, %120 : vector<8x128xf32>
    %c44 = arith.constant 44 : index
    %122 = memref.load %arg1[%c44] : memref<95xf32, #tpu.memory_space<smem>>
    %123 = vector.broadcast %122 : f32 to vector<8x128xf32>
    %124 = arith.mulf %15, %123 : vector<8x128xf32>
    %125 = arith.addf %121, %124 : vector<8x128xf32>
    %126 = math.exp %125 : vector<8x128xf32>
    %cst_30 = arith.constant 1.000000e+00 : f32
    %127 = vector.broadcast %cst_30 : f32 to vector<8x128xf32>
    %128 = arith.addf %127, %126 : vector<8x128xf32>
    %129 = tpu.reciprocal %128 {approx = true} : vector<8x128xf32> -> vector<8x128xf32>
    %c3_31 = arith.constant 3 : index
    %130 = memref.load %arg1[%c3_31] : memref<95xf32, #tpu.memory_space<smem>>
    %131 = vector.broadcast %130 : f32 to vector<8x128xf32>
    %132 = arith.mulf %1, %131 : vector<8x128xf32>
    %c51 = arith.constant 51 : index
    %133 = memref.load %arg1[%c51] : memref<95xf32, #tpu.memory_space<smem>>
    %134 = vector.broadcast %133 : f32 to vector<8x128xf32>
    %135 = arith.addf %132, %134 : vector<8x128xf32>
    %c9 = arith.constant 9 : index
    %136 = memref.load %arg1[%c9] : memref<95xf32, #tpu.memory_space<smem>>
    %137 = vector.broadcast %136 : f32 to vector<8x128xf32>
    %138 = arith.mulf %3, %137 : vector<8x128xf32>
    %139 = arith.addf %135, %138 : vector<8x128xf32>
    %c15 = arith.constant 15 : index
    %140 = memref.load %arg1[%c15] : memref<95xf32, #tpu.memory_space<smem>>
    %141 = vector.broadcast %140 : f32 to vector<8x128xf32>
    %142 = arith.mulf %5, %141 : vector<8x128xf32>
    %143 = arith.addf %139, %142 : vector<8x128xf32>
    %c21 = arith.constant 21 : index
    %144 = memref.load %arg1[%c21] : memref<95xf32, #tpu.memory_space<smem>>
    %145 = vector.broadcast %144 : f32 to vector<8x128xf32>
    %146 = arith.mulf %7, %145 : vector<8x128xf32>
    %147 = arith.addf %143, %146 : vector<8x128xf32>
    %c27 = arith.constant 27 : index
    %148 = memref.load %arg1[%c27] : memref<95xf32, #tpu.memory_space<smem>>
    %149 = vector.broadcast %148 : f32 to vector<8x128xf32>
    %150 = arith.mulf %9, %149 : vector<8x128xf32>
    %151 = arith.addf %147, %150 : vector<8x128xf32>
    %c33 = arith.constant 33 : index
    %152 = memref.load %arg1[%c33] : memref<95xf32, #tpu.memory_space<smem>>
    %153 = vector.broadcast %152 : f32 to vector<8x128xf32>
    %154 = arith.mulf %11, %153 : vector<8x128xf32>
    %155 = arith.addf %151, %154 : vector<8x128xf32>
    %c39 = arith.constant 39 : index
    %156 = memref.load %arg1[%c39] : memref<95xf32, #tpu.memory_space<smem>>
    %157 = vector.broadcast %156 : f32 to vector<8x128xf32>
    %158 = arith.mulf %13, %157 : vector<8x128xf32>
    %159 = arith.addf %155, %158 : vector<8x128xf32>
    %c45 = arith.constant 45 : index
    %160 = memref.load %arg1[%c45] : memref<95xf32, #tpu.memory_space<smem>>
    %161 = vector.broadcast %160 : f32 to vector<8x128xf32>
    %162 = arith.mulf %15, %161 : vector<8x128xf32>
    %163 = arith.addf %159, %162 : vector<8x128xf32>
    %164 = math.exp %163 : vector<8x128xf32>
    %cst_32 = arith.constant 1.000000e+00 : f32
    %165 = vector.broadcast %cst_32 : f32 to vector<8x128xf32>
    %166 = arith.addf %165, %164 : vector<8x128xf32>
    %167 = tpu.reciprocal %166 {approx = true} : vector<8x128xf32> -> vector<8x128xf32>
    %c4_33 = arith.constant 4 : index
    %168 = memref.load %arg1[%c4_33] : memref<95xf32, #tpu.memory_space<smem>>
    %169 = vector.broadcast %168 : f32 to vector<8x128xf32>
    %170 = arith.mulf %1, %169 : vector<8x128xf32>
    %c52 = arith.constant 52 : index
    %171 = memref.load %arg1[%c52] : memref<95xf32, #tpu.memory_space<smem>>
    %172 = vector.broadcast %171 : f32 to vector<8x128xf32>
    %173 = arith.addf %170, %172 : vector<8x128xf32>
    %c10 = arith.constant 10 : index
    %174 = memref.load %arg1[%c10] : memref<95xf32, #tpu.memory_space<smem>>
    %175 = vector.broadcast %174 : f32 to vector<8x128xf32>
    %176 = arith.mulf %3, %175 : vector<8x128xf32>
    %177 = arith.addf %173, %176 : vector<8x128xf32>
    %c16 = arith.constant 16 : index
    %178 = memref.load %arg1[%c16] : memref<95xf32, #tpu.memory_space<smem>>
    %179 = vector.broadcast %178 : f32 to vector<8x128xf32>
    %180 = arith.mulf %5, %179 : vector<8x128xf32>
    %181 = arith.addf %177, %180 : vector<8x128xf32>
    %c22 = arith.constant 22 : index
    %182 = memref.load %arg1[%c22] : memref<95xf32, #tpu.memory_space<smem>>
    %183 = vector.broadcast %182 : f32 to vector<8x128xf32>
    %184 = arith.mulf %7, %183 : vector<8x128xf32>
    %185 = arith.addf %181, %184 : vector<8x128xf32>
    %c28 = arith.constant 28 : index
    %186 = memref.load %arg1[%c28] : memref<95xf32, #tpu.memory_space<smem>>
    %187 = vector.broadcast %186 : f32 to vector<8x128xf32>
    %188 = arith.mulf %9, %187 : vector<8x128xf32>
    %189 = arith.addf %185, %188 : vector<8x128xf32>
    %c34 = arith.constant 34 : index
    %190 = memref.load %arg1[%c34] : memref<95xf32, #tpu.memory_space<smem>>
    %191 = vector.broadcast %190 : f32 to vector<8x128xf32>
    %192 = arith.mulf %11, %191 : vector<8x128xf32>
    %193 = arith.addf %189, %192 : vector<8x128xf32>
    %c40 = arith.constant 40 : index
    %194 = memref.load %arg1[%c40] : memref<95xf32, #tpu.memory_space<smem>>
    %195 = vector.broadcast %194 : f32 to vector<8x128xf32>
    %196 = arith.mulf %13, %195 : vector<8x128xf32>
    %197 = arith.addf %193, %196 : vector<8x128xf32>
    %c46 = arith.constant 46 : index
    %198 = memref.load %arg1[%c46] : memref<95xf32, #tpu.memory_space<smem>>
    %199 = vector.broadcast %198 : f32 to vector<8x128xf32>
    %200 = arith.mulf %15, %199 : vector<8x128xf32>
    %201 = arith.addf %197, %200 : vector<8x128xf32>
    %202 = math.exp %201 : vector<8x128xf32>
    %cst_34 = arith.constant 1.000000e+00 : f32
    %203 = vector.broadcast %cst_34 : f32 to vector<8x128xf32>
    %204 = arith.addf %203, %202 : vector<8x128xf32>
    %205 = tpu.reciprocal %204 {approx = true} : vector<8x128xf32> -> vector<8x128xf32>
    %c5_35 = arith.constant 5 : index
    %206 = memref.load %arg1[%c5_35] : memref<95xf32, #tpu.memory_space<smem>>
    %207 = vector.broadcast %206 : f32 to vector<8x128xf32>
    %208 = arith.mulf %1, %207 : vector<8x128xf32>
    %c53 = arith.constant 53 : index
    %209 = memref.load %arg1[%c53] : memref<95xf32, #tpu.memory_space<smem>>
    %210 = vector.broadcast %209 : f32 to vector<8x128xf32>
    %211 = arith.addf %208, %210 : vector<8x128xf32>
    %c11 = arith.constant 11 : index
    %212 = memref.load %arg1[%c11] : memref<95xf32, #tpu.memory_space<smem>>
    %213 = vector.broadcast %212 : f32 to vector<8x128xf32>
    %214 = arith.mulf %3, %213 : vector<8x128xf32>
    %215 = arith.addf %211, %214 : vector<8x128xf32>
    %c17 = arith.constant 17 : index
    %216 = memref.load %arg1[%c17] : memref<95xf32, #tpu.memory_space<smem>>
    %217 = vector.broadcast %216 : f32 to vector<8x128xf32>
    %218 = arith.mulf %5, %217 : vector<8x128xf32>
    %219 = arith.addf %215, %218 : vector<8x128xf32>
    %c23 = arith.constant 23 : index
    %220 = memref.load %arg1[%c23] : memref<95xf32, #tpu.memory_space<smem>>
    %221 = vector.broadcast %220 : f32 to vector<8x128xf32>
    %222 = arith.mulf %7, %221 : vector<8x128xf32>
    %223 = arith.addf %219, %222 : vector<8x128xf32>
    %c29 = arith.constant 29 : index
    %224 = memref.load %arg1[%c29] : memref<95xf32, #tpu.memory_space<smem>>
    %225 = vector.broadcast %224 : f32 to vector<8x128xf32>
    %226 = arith.mulf %9, %225 : vector<8x128xf32>
    %227 = arith.addf %223, %226 : vector<8x128xf32>
    %c35 = arith.constant 35 : index
    %228 = memref.load %arg1[%c35] : memref<95xf32, #tpu.memory_space<smem>>
    %229 = vector.broadcast %228 : f32 to vector<8x128xf32>
    %230 = arith.mulf %11, %229 : vector<8x128xf32>
    %231 = arith.addf %227, %230 : vector<8x128xf32>
    %c41 = arith.constant 41 : index
    %232 = memref.load %arg1[%c41] : memref<95xf32, #tpu.memory_space<smem>>
    %233 = vector.broadcast %232 : f32 to vector<8x128xf32>
    %234 = arith.mulf %13, %233 : vector<8x128xf32>
    %235 = arith.addf %231, %234 : vector<8x128xf32>
    %c47 = arith.constant 47 : index
    %236 = memref.load %arg1[%c47] : memref<95xf32, #tpu.memory_space<smem>>
    %237 = vector.broadcast %236 : f32 to vector<8x128xf32>
    %238 = arith.mulf %15, %237 : vector<8x128xf32>
    %239 = arith.addf %235, %238 : vector<8x128xf32>
    %240 = math.exp %239 : vector<8x128xf32>
    %cst_36 = arith.constant 1.000000e+00 : f32
    %241 = vector.broadcast %cst_36 : f32 to vector<8x128xf32>
    %242 = arith.addf %241, %240 : vector<8x128xf32>
    %243 = tpu.reciprocal %242 {approx = true} : vector<8x128xf32> -> vector<8x128xf32>
    %c54 = arith.constant 54 : index
    %244 = memref.load %arg1[%c54] : memref<95xf32, #tpu.memory_space<smem>>
    %245 = vector.broadcast %244 : f32 to vector<8x128xf32>
    %246 = arith.mulf %53, %245 : vector<8x128xf32>
    %c78 = arith.constant 78 : index
    %247 = memref.load %arg1[%c78] : memref<95xf32, #tpu.memory_space<smem>>
    %248 = vector.broadcast %247 : f32 to vector<8x128xf32>
    %249 = arith.addf %246, %248 : vector<8x128xf32>
    %c58 = arith.constant 58 : index
    %250 = memref.load %arg1[%c58] : memref<95xf32, #tpu.memory_space<smem>>
    %251 = vector.broadcast %250 : f32 to vector<8x128xf32>
    %252 = arith.mulf %91, %251 : vector<8x128xf32>
    %253 = arith.addf %249, %252 : vector<8x128xf32>
    %c62 = arith.constant 62 : index
    %254 = memref.load %arg1[%c62] : memref<95xf32, #tpu.memory_space<smem>>
    %255 = vector.broadcast %254 : f32 to vector<8x128xf32>
    %256 = arith.mulf %129, %255 : vector<8x128xf32>
    %257 = arith.addf %253, %256 : vector<8x128xf32>
    %c66 = arith.constant 66 : index
    %258 = memref.load %arg1[%c66] : memref<95xf32, #tpu.memory_space<smem>>
    %259 = vector.broadcast %258 : f32 to vector<8x128xf32>
    %260 = arith.mulf %167, %259 : vector<8x128xf32>
    %261 = arith.addf %257, %260 : vector<8x128xf32>
    %c70 = arith.constant 70 : index
    %262 = memref.load %arg1[%c70] : memref<95xf32, #tpu.memory_space<smem>>
    %263 = vector.broadcast %262 : f32 to vector<8x128xf32>
    %264 = arith.mulf %205, %263 : vector<8x128xf32>
    %265 = arith.addf %261, %264 : vector<8x128xf32>
    %c74 = arith.constant 74 : index
    %266 = memref.load %arg1[%c74] : memref<95xf32, #tpu.memory_space<smem>>
    %267 = vector.broadcast %266 : f32 to vector<8x128xf32>
    %268 = arith.mulf %243, %267 : vector<8x128xf32>
    %269 = arith.addf %265, %268 : vector<8x128xf32>
    %270 = math.exp %269 : vector<8x128xf32>
    %cst_37 = arith.constant 1.000000e+00 : f32
    %271 = vector.broadcast %cst_37 : f32 to vector<8x128xf32>
    %272 = arith.addf %271, %270 : vector<8x128xf32>
    %273 = tpu.reciprocal %272 {approx = true} : vector<8x128xf32> -> vector<8x128xf32>
    %c55 = arith.constant 55 : index
    %274 = memref.load %arg1[%c55] : memref<95xf32, #tpu.memory_space<smem>>
    %275 = vector.broadcast %274 : f32 to vector<8x128xf32>
    %276 = arith.mulf %53, %275 : vector<8x128xf32>
    %c79 = arith.constant 79 : index
    %277 = memref.load %arg1[%c79] : memref<95xf32, #tpu.memory_space<smem>>
    %278 = vector.broadcast %277 : f32 to vector<8x128xf32>
    %279 = arith.addf %276, %278 : vector<8x128xf32>
    %c59 = arith.constant 59 : index
    %280 = memref.load %arg1[%c59] : memref<95xf32, #tpu.memory_space<smem>>
    %281 = vector.broadcast %280 : f32 to vector<8x128xf32>
    %282 = arith.mulf %91, %281 : vector<8x128xf32>
    %283 = arith.addf %279, %282 : vector<8x128xf32>
    %c63 = arith.constant 63 : index
    %284 = memref.load %arg1[%c63] : memref<95xf32, #tpu.memory_space<smem>>
    %285 = vector.broadcast %284 : f32 to vector<8x128xf32>
    %286 = arith.mulf %129, %285 : vector<8x128xf32>
    %287 = arith.addf %283, %286 : vector<8x128xf32>
    %c67 = arith.constant 67 : index
    %288 = memref.load %arg1[%c67] : memref<95xf32, #tpu.memory_space<smem>>
    %289 = vector.broadcast %288 : f32 to vector<8x128xf32>
    %290 = arith.mulf %167, %289 : vector<8x128xf32>
    %291 = arith.addf %287, %290 : vector<8x128xf32>
    %c71 = arith.constant 71 : index
    %292 = memref.load %arg1[%c71] : memref<95xf32, #tpu.memory_space<smem>>
    %293 = vector.broadcast %292 : f32 to vector<8x128xf32>
    %294 = arith.mulf %205, %293 : vector<8x128xf32>
    %295 = arith.addf %291, %294 : vector<8x128xf32>
    %c75 = arith.constant 75 : index
    %296 = memref.load %arg1[%c75] : memref<95xf32, #tpu.memory_space<smem>>
    %297 = vector.broadcast %296 : f32 to vector<8x128xf32>
    %298 = arith.mulf %243, %297 : vector<8x128xf32>
    %299 = arith.addf %295, %298 : vector<8x128xf32>
    %300 = math.exp %299 : vector<8x128xf32>
    %cst_38 = arith.constant 1.000000e+00 : f32
    %301 = vector.broadcast %cst_38 : f32 to vector<8x128xf32>
    %302 = arith.addf %301, %300 : vector<8x128xf32>
    %303 = tpu.reciprocal %302 {approx = true} : vector<8x128xf32> -> vector<8x128xf32>
    %c56 = arith.constant 56 : index
    %304 = memref.load %arg1[%c56] : memref<95xf32, #tpu.memory_space<smem>>
    %305 = vector.broadcast %304 : f32 to vector<8x128xf32>
    %306 = arith.mulf %53, %305 : vector<8x128xf32>
    %c80 = arith.constant 80 : index
    %307 = memref.load %arg1[%c80] : memref<95xf32, #tpu.memory_space<smem>>
    %308 = vector.broadcast %307 : f32 to vector<8x128xf32>
    %309 = arith.addf %306, %308 : vector<8x128xf32>
    %c60 = arith.constant 60 : index
    %310 = memref.load %arg1[%c60] : memref<95xf32, #tpu.memory_space<smem>>
    %311 = vector.broadcast %310 : f32 to vector<8x128xf32>
    %312 = arith.mulf %91, %311 : vector<8x128xf32>
    %313 = arith.addf %309, %312 : vector<8x128xf32>
    %c64 = arith.constant 64 : index
    %314 = memref.load %arg1[%c64] : memref<95xf32, #tpu.memory_space<smem>>
    %315 = vector.broadcast %314 : f32 to vector<8x128xf32>
    %316 = arith.mulf %129, %315 : vector<8x128xf32>
    %317 = arith.addf %313, %316 : vector<8x128xf32>
    %c68 = arith.constant 68 : index
    %318 = memref.load %arg1[%c68] : memref<95xf32, #tpu.memory_space<smem>>
    %319 = vector.broadcast %318 : f32 to vector<8x128xf32>
    %320 = arith.mulf %167, %319 : vector<8x128xf32>
    %321 = arith.addf %317, %320 : vector<8x128xf32>
    %c72 = arith.constant 72 : index
    %322 = memref.load %arg1[%c72] : memref<95xf32, #tpu.memory_space<smem>>
    %323 = vector.broadcast %322 : f32 to vector<8x128xf32>
    %324 = arith.mulf %205, %323 : vector<8x128xf32>
    %325 = arith.addf %321, %324 : vector<8x128xf32>
    %c76 = arith.constant 76 : index
    %326 = memref.load %arg1[%c76] : memref<95xf32, #tpu.memory_space<smem>>
    %327 = vector.broadcast %326 : f32 to vector<8x128xf32>
    %328 = arith.mulf %243, %327 : vector<8x128xf32>
    %329 = arith.addf %325, %328 : vector<8x128xf32>
    %330 = math.exp %329 : vector<8x128xf32>
    %cst_39 = arith.constant 1.000000e+00 : f32
    %331 = vector.broadcast %cst_39 : f32 to vector<8x128xf32>
    %332 = arith.addf %331, %330 : vector<8x128xf32>
    %333 = tpu.reciprocal %332 {approx = true} : vector<8x128xf32> -> vector<8x128xf32>
    %c57 = arith.constant 57 : index
    %334 = memref.load %arg1[%c57] : memref<95xf32, #tpu.memory_space<smem>>
    %335 = vector.broadcast %334 : f32 to vector<8x128xf32>
    %336 = arith.mulf %53, %335 : vector<8x128xf32>
    %c81 = arith.constant 81 : index
    %337 = memref.load %arg1[%c81] : memref<95xf32, #tpu.memory_space<smem>>
    %338 = vector.broadcast %337 : f32 to vector<8x128xf32>
    %339 = arith.addf %336, %338 : vector<8x128xf32>
    %c61 = arith.constant 61 : index
    %340 = memref.load %arg1[%c61] : memref<95xf32, #tpu.memory_space<smem>>
    %341 = vector.broadcast %340 : f32 to vector<8x128xf32>
    %342 = arith.mulf %91, %341 : vector<8x128xf32>
    %343 = arith.addf %339, %342 : vector<8x128xf32>
    %c65 = arith.constant 65 : index
    %344 = memref.load %arg1[%c65] : memref<95xf32, #tpu.memory_space<smem>>
    %345 = vector.broadcast %344 : f32 to vector<8x128xf32>
    %346 = arith.mulf %129, %345 : vector<8x128xf32>
    %347 = arith.addf %343, %346 : vector<8x128xf32>
    %c69 = arith.constant 69 : index
    %348 = memref.load %arg1[%c69] : memref<95xf32, #tpu.memory_space<smem>>
    %349 = vector.broadcast %348 : f32 to vector<8x128xf32>
    %350 = arith.mulf %167, %349 : vector<8x128xf32>
    %351 = arith.addf %347, %350 : vector<8x128xf32>
    %c73 = arith.constant 73 : index
    %352 = memref.load %arg1[%c73] : memref<95xf32, #tpu.memory_space<smem>>
    %353 = vector.broadcast %352 : f32 to vector<8x128xf32>
    %354 = arith.mulf %205, %353 : vector<8x128xf32>
    %355 = arith.addf %351, %354 : vector<8x128xf32>
    %c77 = arith.constant 77 : index
    %356 = memref.load %arg1[%c77] : memref<95xf32, #tpu.memory_space<smem>>
    %357 = vector.broadcast %356 : f32 to vector<8x128xf32>
    %358 = arith.mulf %243, %357 : vector<8x128xf32>
    %359 = arith.addf %355, %358 : vector<8x128xf32>
    %360 = math.exp %359 : vector<8x128xf32>
    %cst_40 = arith.constant 1.000000e+00 : f32
    %361 = vector.broadcast %cst_40 : f32 to vector<8x128xf32>
    %362 = arith.addf %361, %360 : vector<8x128xf32>
    %363 = tpu.reciprocal %362 {approx = true} : vector<8x128xf32> -> vector<8x128xf32>
    %c82 = arith.constant 82 : index
    %364 = memref.load %arg1[%c82] : memref<95xf32, #tpu.memory_space<smem>>
    %365 = vector.broadcast %364 : f32 to vector<8x128xf32>
    %366 = arith.mulf %273, %365 : vector<8x128xf32>
    %c90 = arith.constant 90 : index
    %367 = memref.load %arg1[%c90] : memref<95xf32, #tpu.memory_space<smem>>
    %368 = vector.broadcast %367 : f32 to vector<8x128xf32>
    %369 = arith.addf %366, %368 : vector<8x128xf32>
    %c84 = arith.constant 84 : index
    %370 = memref.load %arg1[%c84] : memref<95xf32, #tpu.memory_space<smem>>
    %371 = vector.broadcast %370 : f32 to vector<8x128xf32>
    %372 = arith.mulf %303, %371 : vector<8x128xf32>
    %373 = arith.addf %369, %372 : vector<8x128xf32>
    %c86 = arith.constant 86 : index
    %374 = memref.load %arg1[%c86] : memref<95xf32, #tpu.memory_space<smem>>
    %375 = vector.broadcast %374 : f32 to vector<8x128xf32>
    %376 = arith.mulf %333, %375 : vector<8x128xf32>
    %377 = arith.addf %373, %376 : vector<8x128xf32>
    %c88 = arith.constant 88 : index
    %378 = memref.load %arg1[%c88] : memref<95xf32, #tpu.memory_space<smem>>
    %379 = vector.broadcast %378 : f32 to vector<8x128xf32>
    %380 = arith.mulf %363, %379 : vector<8x128xf32>
    %381 = arith.addf %377, %380 : vector<8x128xf32>
    %382 = math.exp %381 : vector<8x128xf32>
    %cst_41 = arith.constant 1.000000e+00 : f32
    %383 = vector.broadcast %cst_41 : f32 to vector<8x128xf32>
    %384 = arith.addf %383, %382 : vector<8x128xf32>
    %385 = tpu.reciprocal %384 {approx = true} : vector<8x128xf32> -> vector<8x128xf32>
    %c83 = arith.constant 83 : index
    %386 = memref.load %arg1[%c83] : memref<95xf32, #tpu.memory_space<smem>>
    %387 = vector.broadcast %386 : f32 to vector<8x128xf32>
    %388 = arith.mulf %273, %387 : vector<8x128xf32>
    %c91 = arith.constant 91 : index
    %389 = memref.load %arg1[%c91] : memref<95xf32, #tpu.memory_space<smem>>
    %390 = vector.broadcast %389 : f32 to vector<8x128xf32>
    %391 = arith.addf %388, %390 : vector<8x128xf32>
    %c85 = arith.constant 85 : index
    %392 = memref.load %arg1[%c85] : memref<95xf32, #tpu.memory_space<smem>>
    %393 = vector.broadcast %392 : f32 to vector<8x128xf32>
    %394 = arith.mulf %303, %393 : vector<8x128xf32>
    %395 = arith.addf %391, %394 : vector<8x128xf32>
    %c87 = arith.constant 87 : index
    %396 = memref.load %arg1[%c87] : memref<95xf32, #tpu.memory_space<smem>>
    %397 = vector.broadcast %396 : f32 to vector<8x128xf32>
    %398 = arith.mulf %333, %397 : vector<8x128xf32>
    %399 = arith.addf %395, %398 : vector<8x128xf32>
    %c89 = arith.constant 89 : index
    %400 = memref.load %arg1[%c89] : memref<95xf32, #tpu.memory_space<smem>>
    %401 = vector.broadcast %400 : f32 to vector<8x128xf32>
    %402 = arith.mulf %363, %401 : vector<8x128xf32>
    %403 = arith.addf %399, %402 : vector<8x128xf32>
    %404 = math.exp %403 : vector<8x128xf32>
    %cst_42 = arith.constant 1.000000e+00 : f32
    %405 = vector.broadcast %cst_42 : f32 to vector<8x128xf32>
    %406 = arith.addf %405, %404 : vector<8x128xf32>
    %407 = tpu.reciprocal %406 {approx = true} : vector<8x128xf32> -> vector<8x128xf32>
    %c92 = arith.constant 92 : index
    %408 = memref.load %arg1[%c92] : memref<95xf32, #tpu.memory_space<smem>>
    %409 = vector.broadcast %408 : f32 to vector<8x128xf32>
    %410 = arith.mulf %385, %409 : vector<8x128xf32>
    %c94 = arith.constant 94 : index
    %411 = memref.load %arg1[%c94] : memref<95xf32, #tpu.memory_space<smem>>
    %412 = vector.broadcast %411 : f32 to vector<8x128xf32>
    %413 = arith.addf %410, %412 : vector<8x128xf32>
    %c93 = arith.constant 93 : index
    %414 = memref.load %arg1[%c93] : memref<95xf32, #tpu.memory_space<smem>>
    %415 = vector.broadcast %414 : f32 to vector<8x128xf32>
    %416 = arith.mulf %407, %415 : vector<8x128xf32>
    %417 = arith.addf %413, %416 : vector<8x128xf32>
    %418 = math.exp %417 : vector<8x128xf32>
    %cst_43 = arith.constant 1.000000e+00 : f32
    %419 = vector.broadcast %cst_43 : f32 to vector<8x128xf32>
    %420 = arith.addf %419, %418 : vector<8x128xf32>
    %421 = tpu.reciprocal %420 {approx = true} : vector<8x128xf32> -> vector<8x128xf32>
    %c0_44 = arith.constant 0 : index
    %c0_45 = arith.constant 0 : index
    %c0_46 = arith.constant 0 : index
    %422 = vector.load %arg3[%c0_44, %c0_45, %c0_46] : memref<1x8x128xf32, #tpu.memory_space<vmem>>, vector<1x8x128xf32>
    %423 = vector.shape_cast %422 : vector<1x8x128xf32> to vector<8x128xf32>
    %424 = vector.shape_cast %421 : vector<8x128xf32> to vector<1x8x128xf32>
    tpu.vector_store %arg3[%c0_44, %c0_45, %c0_46], %424 {strides = array<i32>} : memref<1x8x128xf32, #tpu.memory_space<vmem>>, vector<1x8x128xf32>,
    return
  }
  func.func @transform_0(%arg0: i32) -> i32 {
    %c0_i32 = arith.constant 0 : i32
    %c0_i32_0 = arith.constant 0 : i32
    return %c0_i32 : i32
  }
  func.func @transform_1(%arg0: i32) -> (i32, i32, i32, i32) {
    %c0_i32 = arith.constant 0 : i32
    %c0_i32_0 = arith.constant 0 : i32
    %c0_i32_1 = arith.constant 0 : i32
    %c0_i32_2 = arith.constant 0 : i32
    return %c0_i32, %arg0, %c0_i32_0, %c0_i32_1 : i32, i32, i32, i32
  }
  func.func @transform_2(%arg0: i32) -> (i32, i32, i32) {
    %c0_i32 = arith.constant 0 : i32
    %c0_i32_0 = arith.constant 0 : i32
    %c0_i32_1 = arith.constant 0 : i32
    return %arg0, %c0_i32, %c0_i32_0 : i32, i32, i32
  }
}

</mosaic_0001>

<bundles_post_ra>
// kernel: mlp_forward_fmajor.1
= control target key start
LH: loop header
LB: loop body
LE: loop exit
PB: predicated region body
PF: predicated region fallthrough
CT: control target
= control target key end

     0   :  { %7 = vsyncpa [#allocation4], 0  ;;  %s1006_s0 = inlined_call_operand.vmem [shape: f32[95], index: 0, kind: input, shape index: {}]   ;;  %s1007_s1 = inlined_call_operand.vmem [shape: f32[8,1,8,128], index: 1, kind: input, shape index: {}]   ;;  %s1008_s2 = inlined_call_operand.hbm [shape: f32[1,8,128], index: 2, kind: output, shape index: {}]  }
   0x1   :  { %8 = vsyncpa [#allocation3], 0  ;;  %s15_s11 = sshll.u32 %s1006_s0, 4  ;;  %s16_s11 = int_to_ptr.vmem [resolvable:$true] %s15_s11 }
   0x2   :  { %s617_s12 = scalar_lea.vmem %s16_s11, 16  ;;  %p622_p1 = scmp.lt.s32.totalorder %s16_s11, %s16_s11 }
   0x3   :  { %p618_p0 = scmp.ne.s32.totalorder %s16_s11, %s617_s12  ;;  %p623_p2 = scmp.lt.s32.totalorder %s617_s12, %s617_s12 }
   0x5   :  { %p624_p3 = por %p623_p2, %p622_p1 }
   0x7   :  { %p625_p4 = pnand %p624_p3, %p618_p0 }
   0x9   :  { %628 = shalt.err (!%p625_p4)
}
   0xa   :  { %s655_s13 = smov [#allocation2]  }
   0xb   :  { %18 = dma.vmem_to_smem %s16_s11, 16, %s655_s13, [#allocation4]  }
   0xc   :  { %651 = dma.done.wait [#allocation4], 16  }
   0xd   :  { %652 = vsyncadd [#allocation4], 4294967280 }
   0xe   :  { %24 = sfence }
   0xf   :  { %s40_s14 = sld [smem:[#allocation2]]  ;;  %s470_s16 = sld [smem:[#allocation2 + $0x6]]  ;;  %v682_v0 = vld [vmem:[%s1007_s1] sm:$0xff]  ;;  %v695_v1 = vld [vmem:[%s1007_s1 + $0x8] sm:$0xff]  ;;  %v700_v2 = vld [vmem:[%s1007_s1 + $0x10] sm:$0xff] }
  0x10   :  { %s469_s15 = sld [smem:[#allocation2 + $0x30]]  ;;  %s471_s17 = sld [smem:[#allocation2 + $0xc]]  ;;  %v714_v6 = vld [vmem:[%s1007_s1 + $0x18] sm:$0xff]  ;;  %v719_v7 = vld [vmem:[%s1007_s1 + $0x20] sm:$0xff]  ;;  %v728_v10 = vld [vmem:[%s1007_s1 + $0x28] sm:$0xff] }
  0x11   :  { %s675_s18 = sld [smem:[#allocation2 + $0x12]]  ;;  %s677_s0 = sld [smem:[#allocation2 + $0x18]]  ;;  %v753_v21 = vld [vmem:[%s1007_s1 + $0x30] sm:$0xff]  ;;  %v766_v26 = vld [vmem:[%s1007_s1 + $0x38] sm:$0xff] }
  0x12   :  { %s684_s21 = sld [smem:[#allocation2 + $0x1e]]  ;;  %s686_s22 = sld [smem:[#allocation2 + $0x24]] }
  0x13   :  { %s688_s23 = sld [smem:[#allocation2 + $0x2a]]  ;;  %s690_s24 = sld [smem:[#allocation2 + $0x1]] }
  0x14   :  { %s702_s29 = sld [smem:[#allocation2 + $0x31]]  ;;  %s704_s30 = sld [smem:[#allocation2 + $0x7]] }
  0x15   :  { %v41_v3 = vstv %s40_s14  ;;  %s707_s3 = sld [smem:[#allocation2 + $0xd]]  ;;  %s709_s4 = sld [smem:[#allocation2 + $0x13]]  ;;  %v47_v8 = vstv %s470_s16 }
  0x16   :  { %v42_v4 = vmul.f32 %v41_v3, %v682_v0  ;;  %v44_v5 = vstv %s469_s15  ;;  %v51_v9 = vstv %s471_s17  ;;  %s721_s9 = sld [smem:[#allocation2 + $0x19]]  ;;  %s723_s10 = sld [smem:[#allocation2 + $0x1f]]  ;;  %v48_v12 = vmul.f32 %v695_v1, %v47_v8 }
  0x17   :  { %v52_v13 = vmul.f32 %v700_v2, %v51_v9  ;;  %v55_v14 = vstv %s675_s18  ;;  %s733_s13 = sld [smem:[#allocation2 + $0x25]]  ;;  %s735_s14 = sld [smem:[#allocation2 + $0x2b]]  ;;  %v59_v15 = vstv %s677_s0 }
  0x18   :  { %v45_v11 = vadd.f32 %v44_v5, %v42_v4  ;;  %v63_v16 = vstv %s684_s21  ;;  %s739_s15 = sld [smem:[#allocation2 + $0x2]]  ;;  %v56_v18 = vmul.f32 %v714_v6, %v55_v14  ;;  %v60_v19 = vmul.f32 %v719_v7, %v59_v15  ;;  %s746_s17 = sld [smem:[#allocation2 + $0x8]] }
  0x19   :  { %s741_s16 = sld [smem:[#allocation2 + $0x32]]  ;;  %v67_v20 = vstv %s686_s22  ;;  %s748_s18 = sld [smem:[#allocation2 + $0xe]]  ;;  %v64_v22 = vmul.f32 %v728_v10, %v63_v16  ;;  %v79_v23 = vstv %s690_s24  ;;  %v71_v28 = vstv %s688_s23 }
  0x1a   :  { %v49_v17 = vadd.f32 %v48_v12, %v45_v11  ;;  %v82_v24 = vstv %s702_s29  ;;  %v85_v25 = vstv %s704_s30  ;;  %s759_s20 = sld [smem:[#allocation2 + $0x14]]  ;;  %s761_s21 = sld [smem:[#allocation2 + $0x1a]]  ;;  %v80_v29 = vmul.f32 %v79_v23, %v682_v0 }
  0x1b   :  { %v86_v30 = vmul.f32 %v695_v1, %v85_v25  ;;  %s771_s26 = sld [smem:[#allocation2 + $0x20]]  ;;  %v89_v31 = vstv %s707_s3  ;;  %v93_v32 = vstv %s709_s4  ;;  %s777_s24 = sld [smem:[#allocation2 + $0x26]]  ;;  %v68_v36 = vmul.f32 %v753_v21, %v67_v20 }
  0x1c   :  { %v53_v27 = vadd.f32 %v52_v13, %v49_v17  ;;  %v97_v33 = vstv %s721_s9  ;;  %v101_v34 = vstv %s723_s10  ;;  %v83_v37 = vadd.f32 %v82_v24, %v80_v29  ;;  %s781_s1 = sld [smem:[#allocation2 + $0x2c]]  ;;  %s783_s23 = sld [smem:[#allocation2 + $0x3]] }
  0x1d   :  { %v90_v38 = vmul.f32 %v700_v2, %v89_v31  ;;  %v72_v39 = vmul.f32 %v766_v26, %v71_v28  ;;  %v94_v40 = vmul.f32 %v714_v6, %v93_v32  ;;  %v98_v41 = vmul.f32 %v719_v7, %v97_v33  ;;  %s789_s27 = sld [smem:[#allocation2 + $0x33]]  ;;  %s791_s28 = sld [smem:[#allocation2 + $0x9]] }
  0x1e   :  { %v57_v35 = vadd.f32 %v56_v18, %v53_v27  ;;  %v102_v42 = vmul.f32 %v728_v10, %v101_v34  ;;  %v87_v44 = vadd.f32 %v86_v30, %v83_v37  ;;  %v105_v45 = vstv %s733_s13  ;;  %s795_s29 = sld [smem:[#allocation2 + $0xf]]  ;;  %s801_s30 = sld [smem:[#allocation2 + $0x15]] }
  0x1f   :  { %v109_v46 = vstv %s735_s14  ;;  %v117_v47 = vstv %s739_s15  ;;  %v120_v48 = vstv %s741_s16  ;;  %v123_v49 = vstv %s746_s17  ;;  %s803_s3 = sld [smem:[#allocation2 + $0x1b]]  ;;  %s811_s4 = sld [smem:[#allocation2 + $0x21]] }
  0x20   :  { %v61_v43 = vadd.f32 %v60_v19, %v57_v35  ;;  %v127_v50 = vstv %s748_s18  ;;  %v91_v52 = vadd.f32 %v90_v38, %v87_v44  ;;  %v118_v53 = vmul.f32 %v117_v47, %v682_v0  ;;  %s818_s5 = sld [smem:[#allocation2 + $0x27]]  ;;  %s820_s6 = sld [smem:[#allocation2 + $0x4]] }
  0x21   :  { %v124_v54 = vmul.f32 %v695_v1, %v123_v49  ;;  %v106_v55 = vmul.f32 %v753_v21, %v105_v45  ;;  %v131_v56 = vstv %s759_s20  ;;  %v135_v57 = vstv %s761_s21  ;;  %s823_s7 = sld [smem:[#allocation2 + $0x2d]]  ;;  %s825_s8 = sld [smem:[#allocation2 + $0x34]] }
  0x22   :  { %v65_v51 = vadd.f32 %v64_v22, %v61_v43  ;;  %v139_v58 = vstv %s771_s26  ;;  %v95_v60 = vadd.f32 %v94_v40, %v91_v52  ;;  %v121_v61 = vadd.f32 %v120_v48, %v118_v53  ;;  %s831_s9 = sld [smem:[#allocation2 + $0xa]]  ;;  %s833_s10 = sld [smem:[#allocation2 + $0x10]] }
  0x23   :  { %v128_v62 = vmul.f32 %v700_v2, %v127_v50  ;;  %v110_v63 = vmul.f32 %v766_v26, %v109_v46  ;;  %v132_v3 = vmul.f32 %v714_v6, %v131_v56  ;;  %v136_v4 = vmul.f32 %v719_v7, %v135_v57  ;;  %s840_s11 = sld [smem:[#allocation2 + $0x16]]  ;;  %s842_s12 = sld [smem:[#allocation2 + $0x1c]] }
  0x24   :  { %v69_v59 = vadd.f32 %v68_v36, %v65_v51  ;;  %v140_v5 = vmul.f32 %v728_v10, %v139_v58  ;;  %v99_v9 = vadd.f32 %v98_v41, %v95_v60  ;;  %v125_v11 = vadd.f32 %v124_v54, %v121_v61  ;;  %s848_s13 = sld [smem:[#allocation2 + $0x22]]  ;;  %s851_s14 = sld [smem:[#allocation2 + $0x28]] }
  0x25   :  { %v143_v12 = vstv %s777_s24  ;;  %v147_v13 = vstv %s781_s1  ;;  %v155_v14 = vstv %s783_s23  ;;  %v158_v15 = vstv %s789_s27  ;;  %s857_s15 = sld [smem:[#allocation2 + $0x2e]]  ;;  %s859_s16 = sld [smem:[#allocation2 + $0x5]] }
  0x26   :  { %v73_v8 = vadd.f32 %v72_v39, %v69_v59  ;;  %v161_v16 = vstv %s791_s28  ;;  %v103_v18 = vadd.f32 %v102_v42, %v99_v9  ;;  %v129_v19 = vadd.f32 %v128_v62, %v125_v11  ;;  %s862_s17 = sld [smem:[#allocation2 + $0x35]]  ;;  %s868_s18 = sld [smem:[#allocation2 + $0xb]] }
  0x27   :  { %v156_v20 = vmul.f32 %v155_v14, %v682_v0  ;;  %v162_v22 = vmul.f32 %v695_v1, %v161_v16  ;;  %v165_v23 = vstv %s795_s29  ;;  %v169_v24 = vstv %s801_s30  ;;  %s870_s19 = sld [smem:[#allocation2 + $0x11]]  ;;  %s876_s0 = sld [smem:[#allocation2 + $0x17]] }
  0x28   :  { %v74_v17 = vmul.f32 1.442695, %v73_v8  ;;  %v173_v25 = vstv %s803_s3  ;;  %v107_v27 = vadd.f32 %v106_v55, %v103_v18  ;;  %v133_v28 = vadd.f32 %v132_v3, %v129_v19  ;;  %s878_s20 = sld [smem:[#allocation2 + $0x1d]]  ;;  %s884_s21 = sld [smem:[#allocation2 + $0x23]] }
  0x29   :  { %v159_v29 = vadd.f32 %v158_v15, %v156_v20  ;;  %v144_v30 = vmul.f32 %v753_v21, %v143_v12  ;;  %v148_v31 = vmul.f32 %v766_v26, %v147_v13  ;;  %v166_v32 = vmul.f32 %v700_v2, %v165_v23  ;;  %s891_s22 = sld [smem:[#allocation2 + $0x29]]  ;;  %s897_s25 = sld [smem:[#allocation2 + $0x2f]] }
  0x2a   :  { %565 = vpow2.f32 %v74_v17  ;;  %v177_v33 = vstv %s811_s4  ;;  %v111_v34 = vadd.f32 %v110_v63, %v107_v27  ;;  %v137_v35 = vadd.f32 %v136_v4, %v133_v28  ;;  %s909_s26 = sld [smem:[#allocation2 + $0x36]]  ;;  %s912_s24 = sld [smem:[#allocation2 + $0x37]] }
  0x2b   :  { %v163_v36 = vadd.f32 %v162_v22, %v159_v29  ;;  %v170_v37 = vmul.f32 %v714_v6, %v169_v24  ;;  %v174_v38 = vmul.f32 %v719_v7, %v173_v25  ;;  %v178_v39 = vmul.f32 %v728_v10, %v177_v33  ;;  %s914_s1 = sld [smem:[#allocation2 + $0x38]]  ;;  %s917_s23 = sld [smem:[#allocation2 + $0x4e]] }
  0x2c   :  { %v181_v40 = vstv %s818_s5  ;;  %v193_v41 = vstv %s820_s6  ;;  %v112_v42 = vmul.f32 1.442695, %v111_v34  ;;  %v141_v43 = vadd.f32 %v140_v5, %v137_v35  ;;  %s919_s27 = sld [smem:[#allocation2 + $0x39]]  ;;  %s922_s28 = sld [smem:[#allocation2 + $0x3a]] }
  0x2d   :  { %v167_v44 = vadd.f32 %v166_v32, %v163_v36  ;;  %v196_v45 = vstv %s825_s8  ;;  %v185_v46 = vstv %s823_s7  ;;  %v194_v47 = vmul.f32 %v193_v41, %v682_v0  ;;  %s924_s29 = sld [smem:[#allocation2 + $0x4f]]  ;;  %s926_s30 = sld [smem:[#allocation2 + $0x3b]] }
  0x2e   :  { %v199_v48 = vstv %s831_s9  ;;  %v203_v49 = vstv %s833_s10  ;;  %567 = vpow2.f32 %v112_v42  ;;  %v145_v50 = vadd.f32 %v144_v30, %v141_v43  ;;  %s929_s3 = sld [smem:[#allocation2 + $0x50]]  ;;  %s931_s4 = sld [smem:[#allocation2 + $0x3c]] }
  0x2f   :  { %v171_v51 = vadd.f32 %v170_v37, %v167_v44  ;;  %v200_v52 = vmul.f32 %v695_v1, %v199_v48  ;;  %v197_v53 = vadd.f32 %v196_v45, %v194_v47  ;;  %v204_v54 = vmul.f32 %v700_v2, %v203_v49  ;;  %s933_s5 = sld [smem:[#allocation2 + $0x51]]  ;;  %s935_s6 = sld [smem:[#allocation2 + $0x3d]] }
  0x30   :  { %v207_v55 = vstv %s840_s11  ;;  %v211_v56 = vstv %s842_s12  ;;  %v149_v57 = vadd.f32 %v148_v31, %v145_v50  ;;  %v182_v59 = vmul.f32 %v753_v21, %v181_v40  ;;  %s938_s7 = sld [smem:[#allocation2 + $0x3e]]  ;;  %s941_s8 = sld [smem:[#allocation2 + $0x3f]] }
  0x31   :  { %v175_v58 = vadd.f32 %v174_v38, %v171_v51  ;;  %v186_v60 = vmul.f32 %v766_v26, %v185_v46  ;;  %v201_v61 = vadd.f32 %v200_v52, %v197_v53  ;;  %v208_v62 = vmul.f32 %v714_v6, %v207_v55  ;;  %s945_s9 = sld [smem:[#allocation2 + $0x40]]  ;;  %s948_s10 = sld [smem:[#allocation2 + $0x41]] }
  0x32   :  { %v215_v63 = vstv %s848_s13  ;;  %v150_v4 = vmul.f32 1.442695, %v149_v57  ;;  %v212_v8 = vmul.f32 %v719_v7, %v211_v56  ;;  %v219_v9 = vstv %s851_s14  ;;  %s955_s11 = sld [smem:[#allocation2 + $0x42]]  ;;  %s957_s12 = sld [smem:[#allocation2 + $0x43]] }
  0x33   :  { %v179_v5 = vadd.f32 %v178_v39, %v175_v58  ;;  %v205_v11 = vadd.f32 %v204_v54, %v201_v61  ;;  %v216_v12 = vmul.f32 %v728_v10, %v215_v63  ;;  %v223_v13 = vstv %s857_s15  ;;  %s961_s13 = sld [smem:[#allocation2 + $0x44]]  ;;  %s963_s14 = sld [smem:[#allocation2 + $0x45]] }
  0x34   :  { %v566_v3 = vpop.eup %565  ;;  %v231_v14 = vstv %s859_s16  ;;  %569 = vpow2.f32 %v150_v4  ;;  %v234_v17 = vstv %s862_s17  ;;  %v237_v20 = vstv %s868_s18  ;;  %s969_s15 = sld [smem:[#allocation2 + $0x46]]  ;;  %s971_s16 = sld [smem:[#allocation2 + $0x47]] }
  0x35   :  { %v183_v15 = vadd.f32 %v182_v59, %v179_v5  ;;  %v232_v16 = vmul.f32 %v231_v14, %v682_v0  ;;  %v76_v18 = vadd.f32 1.0, %v566_v3  ;;  %v209_v19 = vadd.f32 %v208_v62, %v205_v11  ;;  %s973_s17 = sld [smem:[#allocation2 + $0x48]]  ;;  %s975_s18 = sld [smem:[#allocation2 + $0x49]] }
  0x36   :  { %v241_v22 = vstv %s870_s19  ;;  %v238_v25 = vmul.f32 %v695_v1, %v237_v20  ;;  %v220_v29 = vmul.f32 %v753_v21, %v219_v9  ;;  %v245_v30 = vstv %s876_s0  ;;  %s981_s19 = sld [smem:[#allocation2 + $0x4a]]  ;;  %s983_s0 = sld [smem:[#allocation2 + $0x4b]] }
  0x37   :  { %v187_v23 = vadd.f32 %v186_v60, %v183_v15  ;;  %v235_v24 = vadd.f32 %v234_v17, %v232_v16  ;;  %v242_v27 = vmul.f32 %v700_v2, %v241_v22  ;;  %v213_v28 = vadd.f32 %v212_v8, %v209_v19 }
  0x38   :  { %v249_v0 = vstv %s878_s20  ;;  %v568_v31 = vpop.eup %567  ;;  %v224_v33 = vmul.f32 %v766_v26, %v223_v13  ;;  %v246_v35 = vmul.f32 %v714_v6, %v245_v30  ;;  %571 = vrcp.f32 %v76_v18  ;;  %s542_s20 = sld [smem:[#allocation2 + $0x4c]] }
  0x39   :  { %v188_v32 = vmul.f32 1.442695, %v187_v23  ;;  %v239_v34 = vadd.f32 %v238_v25, %v235_v24  ;;  %v114_v36 = vadd.f32 1.0, %v568_v31  ;;  %v217_v37 = vadd.f32 %v216_v12, %v213_v28 }
  0x3a   :  { %v253_v1 = vstv %s884_s21  ;;  %v250_v38 = vmul.f32 %v719_v7, %v249_v0  ;;  %v257_v40 = vstv %s891_s22  ;;  %v261_v43 = vstv %s897_s25  ;;  %s549_s21 = sld [smem:[#allocation2 + $0x4d]]  ;;  %s550_s22 = sld [smem:[#allocation2 + $0x52]] }
  0x3b   :  { %573 = vpow2.f32 %v188_v32  ;;  %v243_v2 = vadd.f32 %v242_v27, %v239_v34  ;;  %v221_v39 = vadd.f32 %v220_v29, %v217_v37  ;;  %v254_v42 = vmul.f32 %v728_v10, %v253_v1  ;;  %s991_s25 = sld [smem:[#allocation2 + $0x5a]] }
  0x3c   :  { %575 = vrcp.f32 %v114_v36  ;;  %v258_v45 = vmul.f32 %v753_v21, %v257_v40  ;;  %v262_v48 = vmul.f32 %v766_v26, %v261_v43  ;;  %v269_v50 = vstv %s909_s26  ;;  %s552_s26 = sld [smem:[#allocation2 + $0x54]] }
  0x3d   :  { %v247_v41 = vadd.f32 %v246_v35, %v243_v2  ;;  %v225_v6 = vadd.f32 %v224_v33, %v221_v39  ;;  %v299_v26 = vstv %s912_s24  ;;  %v329_v53 = vstv %s914_s1  ;;  %s555_s24 = sld [smem:[#allocation2 + $0x53]]  ;;  %s553_s1 = sld [smem:[#allocation2 + $0x56]] }
  0x3e   :  { %v570_v44 = vpop.eup %569  ;;  %v272_v55 = vstv %s917_s23  ;;  %v359_v56 = vstv %s919_s27  ;;  %v275_v59 = vstv %s922_s28  ;;  %v302_v60 = vstv %s924_s29  ;;  %s557_s23 = sld [smem:[#allocation2 + $0x55]]  ;;  %s556_s27 = sld [smem:[#allocation2 + $0x5b]] }
  0x3f   :  { %v251_v7 = vadd.f32 %v250_v38, %v247_v41  ;;  %v152_v10 = vadd.f32 1.0, %v570_v44  ;;  %v226_v46 = vmul.f32 1.442695, %v225_v6  ;;  %v305_v63 = vstv %s926_s30  ;;  %s558_s28 = sld [smem:[#allocation2 + $0x57]]  ;;  %s554_s29 = sld [smem:[#allocation2 + $0x58]] }
  0x40   :  { %v332_v4 = vstv %s929_s3  ;;  %v335_v5 = vstv %s931_s4  ;;  %v362_v9 = vstv %s933_s5  ;;  %v365_v11 = vstv %s935_s6  ;;  %s559_s30 = sld [smem:[#allocation2 + $0x59]]  ;;  %s560_s3 = sld [smem:[#allocation2 + $0x5c]] }
  0x41   :  { %v255_v47 = vadd.f32 %v254_v42, %v251_v7  ;;  %577 = vrcp.f32 %v152_v10  ;;  %v279_v20 = vstv %s938_s7  ;;  %v309_v25 = vstv %s941_s8  ;;  %s562_s4 = sld [smem:[#allocation2 + $0x5d]]  ;;  %s561_s5 = sld [smem:[#allocation2 + $0x5e]] }
  0x42   :  { %579 = vpow2.f32 %v226_v46  ;;  %v572_v49 = vpop.eup %571  ;;  %v339_v27 = vstv %s945_s9  ;;  %v369_v28 = vstv %s948_s10  ;;  %v283_v37 = vstv %s955_s11  ;;  %s656_s6 = smov [#allocation5]  }
  0x43   :  { %v259_v21 = vadd.f32 %v258_v45, %v255_v47  ;;  %v270_v58 = vmul.f32 %v572_v49, %v269_v50  ;;  %v300_v62 = vmul.f32 %v572_v49, %v299_v26  ;;  %v330_v3 = vmul.f32 %v572_v49, %v329_v53  ;;  %s453_s7 = sshll.u32 %s656_s6, 4  ;;  %s454_s7 = int_to_ptr.vmem [resolvable:$true] %s453_s7 }
  0x44   :  { %v360_v8 = vmul.f32 %v572_v49, %v359_v56  ;;  %v313_v2 = vstv %s957_s12  ;;  %v343_v38 = vstv %s961_s13  ;;  %v373_v39 = vstv %s963_s14  ;;  %s629_s8 = scalar_lea.vmem %s454_s7, 128  ;;  %p634_p6 = scmp.lt.s32.totalorder %s454_s7, %s454_s7 }
  0x45   :  { %v574_v51 = vpop.eup %573  ;;  %v263_v52 = vadd.f32 %v262_v48, %v259_v21  ;;  %v273_v12 = vadd.f32 %v272_v55, %v270_v58  ;;  %v303_v15 = vadd.f32 %v302_v60, %v300_v62  ;;  %v333_v17 = vadd.f32 %v332_v4, %v330_v3  ;;  %p630_p5 = scmp.ne.s32.totalorder %s454_s7, %s629_s8  ;;  %p635_p7 = scmp.lt.s32.totalorder %s629_s8, %s629_s8 }
  0x46   :  { %v190_v54 = vadd.f32 1.0, %v574_v51  ;;  %v576_v61 = vpop.eup %575  ;;  %v363_v22 = vadd.f32 %v362_v9, %v360_v8  ;;  %v287_v46 = vstv %s969_s15  ;;  %v317_v47 = vstv %s971_s16 }
  0x47   :  { %v264_v57 = vmul.f32 1.442695, %v263_v52  ;;  %v276_v13 = vmul.f32 %v576_v61, %v275_v59  ;;  %v306_v16 = vmul.f32 %v576_v61, %v305_v63  ;;  %v336_v18 = vmul.f32 %v576_v61, %v335_v5  ;;  %p636_p8 = por %p635_p7, %p634_p6 }
  0x48   :  { %581 = vrcp.f32 %v190_v54  ;;  %v366_v23 = vmul.f32 %v576_v61, %v365_v11  ;;  %v347_v48 = vstv %s973_s17  ;;  %v377_v21 = vstv %s975_s18 }
  0x49   :  { %583 = vpow2.f32 %v264_v57  ;;  %v277_v29 = vadd.f32 %v276_v13, %v273_v12  ;;  %v307_v0 = vadd.f32 %v306_v16, %v303_v15  ;;  %v337_v31 = vadd.f32 %v336_v18, %v333_v17  ;;  %p637_p9 = pnand %p636_p8, %p630_p5 }
  0x4a   :  { %v367_v34 = vadd.f32 %v366_v23, %v363_v22  ;;  %v291_v57 = vstv %s981_s19  ;;  %v321_v58 = vstv %s983_s0  ;;  %v351_v59 = vstv %s542_s20 }
  0x4b   :  { %v578_v14 = vpop.eup %577  ;;  %v381_v60 = vstv %s549_s21 }
  0x4c   :  { %v580_v19 = vpop.eup %579  ;;  %v280_v30 = vmul.f32 %v578_v14, %v279_v20  ;;  %v310_v32 = vmul.f32 %v578_v14, %v309_v25  ;;  %v340_v33 = vmul.f32 %v578_v14, %v339_v27  ;;  %v370_v35 = vmul.f32 %v578_v14, %v369_v28 }
  0x4d   :  { %v228_v24 = vadd.f32 1.0, %v580_v19 }
  0x4e   :  { %v281_v41 = vadd.f32 %v280_v30, %v277_v29  ;;  %v311_v6 = vadd.f32 %v310_v32, %v307_v0  ;;  %v341_v43 = vadd.f32 %v340_v33, %v337_v31  ;;  %v371_v44 = vadd.f32 %v370_v35, %v367_v34 }
  0x4f   :  { %585 = vrcp.f32 %v228_v24  ;;  %v389_v30 = vstv %s550_s22  ;;  %v411_v0 = vstv %s555_s24  ;;  %v395_v31 = vstv %s552_s26 }
  0x50   :  { %v417_v32 = vstv %s557_s23  ;;  %v392_v34 = vstv %s991_s25  ;;  %v399_v35 = vstv %s553_s1 }
  0x52   :  { %v582_v36 = vpop.eup %581 }
  0x53   :  { %v584_v1 = vpop.eup %583  ;;  %v284_v42 = vmul.f32 %v582_v36, %v283_v37  ;;  %v314_v7 = vmul.f32 %v582_v36, %v313_v2  ;;  %v344_v45 = vmul.f32 %v582_v36, %v343_v38  ;;  %v374_v10 = vmul.f32 %v582_v36, %v373_v39 }
  0x54   :  { %v266_v40 = vadd.f32 1.0, %v584_v1  ;;  %v414_v36 = vstv %s556_s27  ;;  %v421_v37 = vstv %s558_s28 }
  0x55   :  { %v285_v50 = vadd.f32 %v284_v42, %v281_v41  ;;  %v315_v51 = vadd.f32 %v314_v7, %v311_v6  ;;  %v345_v52 = vadd.f32 %v344_v45, %v341_v43  ;;  %v375_v26 = vadd.f32 %v374_v10, %v371_v44 }
  0x56   :  { %587 = vrcp.f32 %v266_v40  ;;  %v403_v41 = vstv %s554_s29  ;;  %v425_v6 = vstv %s559_s30 }
  0x59   :  { %v586_v49 = vpop.eup %585 }
  0x5a   :  { %v288_v53 = vmul.f32 %v586_v49, %v287_v46  ;;  %v318_v54 = vmul.f32 %v586_v49, %v317_v47  ;;  %v348_v55 = vmul.f32 %v586_v49, %v347_v48  ;;  %v378_v56 = vmul.f32 %v586_v49, %v377_v21 }
  0x5c   :  { %v289_v61 = vadd.f32 %v288_v53, %v285_v50  ;;  %v319_v62 = vadd.f32 %v318_v54, %v315_v51  ;;  %v349_v63 = vadd.f32 %v348_v55, %v345_v52  ;;  %v379_v3 = vadd.f32 %v378_v56, %v375_v26 }
  0x60   :  { %v588_v4 = vpop.eup %587 }
  0x61   :  { %v292_v5 = vmul.f32 %v588_v4, %v291_v57  ;;  %v322_v8 = vmul.f32 %v588_v4, %v321_v58  ;;  %v352_v9 = vmul.f32 %v588_v4, %v351_v59  ;;  %v382_v11 = vmul.f32 %v588_v4, %v381_v60 }
  0x62   :  { %v433_v58 = vstv %s560_s3  ;;  %v439_v59 = vstv %s562_s4 }
  0x63   :  { %v293_v12 = vadd.f32 %v292_v5, %v289_v61  ;;  %v323_v13 = vadd.f32 %v322_v8, %v319_v62  ;;  %v353_v14 = vadd.f32 %v352_v9, %v349_v63  ;;  %v383_v15 = vadd.f32 %v382_v11, %v379_v3 }
  0x64   :  { %v436_v61 = vstv %s561_s5 }
  0x65   :  { %v294_v16 = vmul.f32 1.442695, %v293_v12  ;;  %v324_v17 = vmul.f32 1.442695, %v323_v13  ;;  %v354_v18 = vmul.f32 1.442695, %v353_v14 }
  0x66   :  { %v384_v19 = vmul.f32 1.442695, %v383_v15 }
  0x67   :  { %589 = vpow2.f32 %v294_v16 }
  0x68   :  { %591 = vpow2.f32 %v324_v17 }
  0x69   :  { %593 = vpow2.f32 %v354_v18 }
  0x6a   :  { %595 = vpow2.f32 %v384_v19 }
  0x71   :  { %v590_v20 = vpop.eup %589 }
  0x72   :  { %v592_v22 = vpop.eup %591  ;;  %v296_v23 = vadd.f32 1.0, %v590_v20 }
  0x73   :  { %v594_v24 = vpop.eup %593  ;;  %v326_v25 = vadd.f32 1.0, %v592_v22 }
  0x74   :  { %v596_v27 = vpop.eup %595  ;;  %597 = vrcp.f32 %v296_v23  ;;  %v356_v28 = vadd.f32 1.0, %v594_v24 }
  0x75   :  { %599 = vrcp.f32 %v326_v25  ;;  %v386_v29 = vadd.f32 1.0, %v596_v27 }
  0x76   :  { %601 = vrcp.f32 %v356_v28 }
  0x77   :  { %603 = vrcp.f32 %v386_v29 }
  0x7e   :  { %v598_v33 = vpop.eup %597 }
  0x7f   :  { %v600_v1 = vpop.eup %599  ;;  %v390_v2 = vmul.f32 %v598_v33, %v389_v30  ;;  %v412_v38 = vmul.f32 %v598_v33, %v411_v0 }
  0x80   :  { %v602_v39 = vpop.eup %601  ;;  %v396_v40 = vmul.f32 %v600_v1, %v395_v31  ;;  %v418_v42 = vmul.f32 %v600_v1, %v417_v32 }
  0x81   :  { %v604_v43 = vpop.eup %603  ;;  %v393_v44 = vadd.f32 %v392_v34, %v390_v2  ;;  %v400_v7 = vmul.f32 %v602_v39, %v399_v35  ;;  %v415_v45 = vadd.f32 %v414_v36, %v412_v38  ;;  %v422_v10 = vmul.f32 %v602_v39, %v421_v37 }
  0x82   :  { %v404_v47 = vmul.f32 %v604_v43, %v403_v41  ;;  %v426_v21 = vmul.f32 %v604_v43, %v425_v6 }
  0x83   :  { %v397_v46 = vadd.f32 %v396_v40, %v393_v44  ;;  %v419_v48 = vadd.f32 %v418_v42, %v415_v45 }
  0x85   :  { %v401_v49 = vadd.f32 %v400_v7, %v397_v46  ;;  %v423_v50 = vadd.f32 %v422_v10, %v419_v48 }
  0x87   :  { %v405_v51 = vadd.f32 %v404_v47, %v401_v49  ;;  %v427_v52 = vadd.f32 %v426_v21, %v423_v50 }
  0x89   :  { %v406_v26 = vmul.f32 1.442695, %v405_v51  ;;  %v428_v53 = vmul.f32 1.442695, %v427_v52 }
  0x8b   :  { %605 = vpow2.f32 %v406_v26 }
  0x8c   :  { %607 = vpow2.f32 %v428_v53 }
  0x95   :  { %v606_v54 = vpop.eup %605 }
  0x96   :  { %v608_v55 = vpop.eup %607  ;;  %v408_v56 = vadd.f32 1.0, %v606_v54 }
  0x97   :  { %v430_v57 = vadd.f32 1.0, %v608_v55 }
  0x98   :  { %609 = vrcp.f32 %v408_v56 }
  0x99   :  { %611 = vrcp.f32 %v430_v57 }
  0xa2   :  { %v610_v60 = vpop.eup %609 }
  0xa3   :  { %v612_v62 = vpop.eup %611  ;;  %v434_v63 = vmul.f32 %v610_v60, %v433_v58 }
  0xa4   :  { %v440_v3 = vmul.f32 %v612_v62, %v439_v59 }
  0xa5   :  { %v437_v4 = vadd.f32 %v436_v61, %v434_v63 }
  0xa7   :  { %v441_v5 = vadd.f32 %v440_v3, %v437_v4 }
  0xa9   :  { %v442_v8 = vmul.f32 1.442695, %v441_v5 }
  0xab   :  { %613 = vpow2.f32 %v442_v8 }
  0xb5   :  { %v614_v9 = vpop.eup %613 }
  0xb6   :  { %v444_v11 = vadd.f32 1.0, %v614_v9 }
  0xb8   :  { %615 = vrcp.f32 %v444_v11 }
  0xc2   :  { %v616_v12 = vpop.eup %615 }
  0xc3   :  { %446 = vst [vmem:[#allocation5] sm:$0xff] %v616_v12 }
  0xc4   :  { %640 = shalt.err (!%p637_p9)
}
  0xc5   :  { %s641_s11 = scalar_lea.hbm %s1008_s2, 128 }
  0xc6   :  { %p642_p10 = scmp.ne.s32.totalorder %s1008_s2, %s641_s11  ;;  %p645_p11 = scmp.lt.u32.totalorder %s641_s11, %s1008_s2 }
  0xc8   :  { %p647_p12 = pnand %p645_p11, %p642_p10 }
  0xca   :  { %650 = shalt.err (!%p647_p12)
}
  0xcb   :  { %456 = dma.vmem_to_hbm [thread:$0]  %s454_s7, 128, %s1008_s2, [#allocation3]  }
  0xcc   :  { %653 = dma.done.wait [#allocation3], 128  }
  0xcd   :  { %654 = vsyncadd [#allocation3], 4294967168 }
  0xce   :  { %460 = vsyncpa [#allocation3], 1 }
  0xcf   :  { %461 = vsyncpa [#allocation4], 1 }

</bundles_post_ra>
